<compile_context>
chip_gen: v5e
topology: v5e:2x2
jax: 0.10.0
libtpu: 0.0.40
codegen_flags: <defaults>
</compile_context>

<pallas_src>
import functools

import jax
import jax.numpy as jnp
from jax.experimental import pallas as pl
from jax.experimental.pallas import tpu as pltpu


def _attention_gate_kernel(g_ref, x_ref, wg_ref, wx_ref, b_ref, wpsi_ref,
                           bpsi_ref, o_ref):
    # g_ref:   (1, F_g, T)    x_ref: (1, F_l, T)     (spatial T on the lane axis)
    # wg_ref:  (F_int, F_g)   wx_ref: (F_int, F_l)   b_ref: (F_int, 1) = bg + bx
    # wpsi_ref:(1, F_int)     bpsi_ref: (1, 1) in SMEM
    # o_ref:   (1, F_l, T)
    g = g_ref[0].astype(jnp.float32)                     # (F_g, T)
    x = x_ref[0]                                         # (F_l, T)
    x_f32 = x.astype(jnp.float32)

    g1 = jnp.dot(wg_ref[...].astype(jnp.float32), g,
                 preferred_element_type=jnp.float32)     # (F_int, T)
    x1 = jnp.dot(wx_ref[...].astype(jnp.float32), x_f32,
                 preferred_element_type=jnp.float32)     # (F_int, T)
    h = jnp.maximum(g1 + x1 + b_ref[...], 0.0)           # ReLU, bias bcast over lanes

    logit = jnp.dot(wpsi_ref[...].astype(jnp.float32), h,
                    preferred_element_type=jnp.float32) + bpsi_ref[0, 0]
    psi = jax.nn.sigmoid(logit)                          # (1, T)

    o_ref[0] = (x_f32 * psi).astype(o_ref.dtype)         # bcast over channel sublanes


def _choose_tile_hw(hw, f_g, f_l, itemsize, max_tile_hw, vmem_budget_bytes):
    """Largest lane-aligned spatial tile that keeps streamed buffers in budget."""
    # Streamed per spatial column: g + x + out, double-buffered by the pipeline.
    bytes_per_col = (f_g + 2 * f_l) * itemsize * 2
    cap = min(max_tile_hw, vmem_budget_bytes // max(bytes_per_col, 1))
    cap = max(128, (cap // 128) * 128)
    if hw <= cap:
        # Full-extent block: always a legal block shape, single spatial step.
        return hw, 1
    # Non-divisible tails are handled by Pallas (boundary blocks are masked).
    return cap, pl.cdiv(hw, cap)


@functools.partial(jax.jit,
                   static_argnames=("max_tile_hw", "vmem_budget_bytes"))
def attention_gate(decoded_features, encoded_features, params,
                   max_tile_hw=2048, vmem_budget_bytes=12 * 1024 * 1024):
    """decoded_features: (N, F_g, H, W); encoded_features: (N, F_l, H, W)."""
    wg, bg, wx, bx, wpsi, bpsi = params
    n, f_g, h, w = decoded_features.shape
    _, f_l, _, _ = encoded_features.shape
    f_int = wg.shape[0]
    hw = h * w

    # Free views: NCHW -> (N, C, H*W). No transposes, pads, or slices.
    g3d = decoded_features.reshape(n, f_g, hw)
    x3d = encoded_features.reshape(n, f_l, hw)

    # Host-side fold of the two projection biases into one (F_int, 1) bias.
    b_fused = (bg + bx).astype(jnp.float32).reshape(f_int, 1)
    bpsi_sc = bpsi.astype(jnp.float32).reshape(1, 1)

    itemsize = max(decoded_features.dtype.itemsize,
                   encoded_features.dtype.itemsize)
    tile_hw, n_sp = _choose_tile_hw(hw, f_g, f_l, itemsize,
                                    max_tile_hw, vmem_budget_bytes)

    grid = (n, n_sp)

    tile_in = lambda c: pl.BlockSpec((1, c, tile_hw), lambda b, s: (b, 0, s))
    const_w = lambda r, c: pl.BlockSpec((r, c), lambda b, s: (0, 0))

    out3d = pl.pallas_call(
        _attention_gate_kernel,
        out_shape=jax.ShapeDtypeStruct((n, f_l, hw), encoded_features.dtype),
        grid=grid,
        in_specs=[
            tile_in(f_g),                 # g tile          (1, F_g, T)
            tile_in(f_l),                 # x tile          (1, F_l, T)
            const_w(f_int, f_g),          # W_g             (F_int, F_g)
            const_w(f_int, f_l),          # W_x             (F_int, F_l)
            const_w(f_int, 1),            # fused bias      (F_int, 1)
            const_w(1, f_int),            # W_psi           (1, F_int)
            pl.BlockSpec(memory_space=pltpu.MemorySpace.SMEM),   # b_psi scalar
        ],
        out_specs=tile_in(f_l),           # lane-dense output blocks
        compiler_params=pltpu.CompilerParams(
            dimension_semantics=("parallel", "parallel"),
            vmem_limit_bytes=32 * 1024 * 1024,
        ),
    )(g3d, x3d, wg, wx, b_fused, wpsi, bpsi_sc)

    return out3d.reshape(n, f_l, h, w)


def init_params(key, f_g, f_l, f_int, dtype=jnp.float32):
    """Deterministic synthetic parameters in PyTorch Conv2d(k=1) orientation.

    Conv weights are (out_c, in_c): W_g (F_int, F_g), W_x (F_int, F_l),
    W_psi (1, F_int); biases are (out_c,).
    """
    k = jax.random.split(key, 6)
    wg = jax.random.normal(k[0], (f_int, f_g), dtype) * 0.1
    bg = jax.random.normal(k[1], (f_int,), dtype) * 0.1
    wx = jax.random.normal(k[2], (f_int, f_l), dtype) * 0.1
    bx = jax.random.normal(k[3], (f_int,), dtype) * 0.1
    wpsi = jax.random.normal(k[4], (1, f_int), dtype) * 0.1
    bpsi = jax.random.normal(k[5], (1, 1), dtype) * 0.1
    return wg, bg, wx, bx, wpsi, bpsi


def attention_gate_ref(decoded_features, encoded_features, params):
    """Pure-JAX reference identical to the PyTorch forward."""
    wg, bg, wx, bx, wpsi, bpsi = params
    g = jnp.transpose(decoded_features, (0, 2, 3, 1))    # (N, H, W, F_g)
    x = jnp.transpose(encoded_features, (0, 2, 3, 1))    # (N, H, W, F_l)
    g1 = g @ wg.T + bg
    x1 = x @ wx.T + bx
    h = jnp.maximum(g1 + x1, 0.0)
    psi = jax.nn.sigmoid(h @ wpsi.T + bpsi[0, 0])        # (N, H, W, 1)
    out = x * psi
    return jnp.transpose(out, (0, 3, 1, 2))


if __name__ == "__main__":
    key = jax.random.PRNGKey(0)
    k_g, k_x, k_p = jax.random.split(key, 3)

    N, F_g, F_l, F_int, H, W = 2, 4, 4, 8, 16, 16
    decoded = jax.random.normal(k_g, (N, F_g, H, W), jnp.float32)
    encoded = jax.random.normal(k_x, (N, F_l, H, W), jnp.float32)
    params = init_params(k_p, F_g, F_l, F_int)

    out = attention_gate(decoded, encoded, params)
    out = jax.block_until_ready(out)

    ref = attention_gate_ref(decoded, encoded, params)
    assert out.shape == encoded.shape
    assert jnp.allclose(out, ref, atol=1e-5, rtol=1e-5)

    print("KERNEL_OK")
</pallas_src>

<mosaic_0001>
module attributes {stable_mosaic.version = 11 : i64} {
  func.func @_attention_gate_kernel(%arg0: i32, %arg1: i32, %arg2: memref<1x4x256xf32, #tpu.memory_space<vmem>>, %arg3: memref<1x4x256xf32, #tpu.memory_space<vmem>>, %arg4: memref<8x4xf32, #tpu.memory_space<vmem>>, %arg5: memref<8x4xf32, #tpu.memory_space<vmem>>, %arg6: memref<8x1xf32, #tpu.memory_space<vmem>>, %arg7: memref<1x8xf32, #tpu.memory_space<vmem>>, %arg8: memref<1x1xf32, #tpu.memory_space<smem>>, %arg9: memref<1x4x256xf32, #tpu.memory_space<vmem>>) attributes {dimension_semantics = [#tpu.dimension_semantics<parallel>, #tpu.dimension_semantics<parallel>], iteration_bounds = array<i64: 2, 1>, scalar_prefetch = 0 : i64, scratch_operands = 0 : i64, tpu.core_type = #tpu.core_type<tc>, window_params = [{transform_indices = @transform_0, window_bounds = array<i64: 1, 4, 256>}, {transform_indices = @transform_1, window_bounds = array<i64: 1, 4, 256>}, {pipeline_mode = #tpu.pipeline_mode<synchronous>, transform_indices = @transform_2, window_bounds = array<i64: 8, 4>}, {pipeline_mode = #tpu.pipeline_mode<synchronous>, transform_indices = @transform_3, window_bounds = array<i64: 8, 4>}, {pipeline_mode = #tpu.pipeline_mode<synchronous>, transform_indices = @transform_4, window_bounds = array<i64: 8, 1>}, {pipeline_mode = #tpu.pipeline_mode<synchronous>, transform_indices = @transform_5, window_bounds = array<i64: 1, 8>}, {transform_indices = @transform_6, window_bounds = array<i64: 1, 1>}, {transform_indices = @transform_7, window_bounds = array<i64: 1, 4, 256>}]} {
    %c0 = arith.constant 0 : index
    %c0_0 = arith.constant 0 : index
    %c0_1 = arith.constant 0 : index
    %0 = vector.load %arg2[%c0, %c0_0, %c0_1] : memref<1x4x256xf32, #tpu.memory_space<vmem>>, vector<1x4x256xf32>
    %1 = vector.shape_cast %0 : vector<1x4x256xf32> to vector<4x256xf32>
    %c0_2 = arith.constant 0 : index
    %c0_3 = arith.constant 0 : index
    %c0_4 = arith.constant 0 : index
    %2 = vector.load %arg3[%c0_2, %c0_3, %c0_4] : memref<1x4x256xf32, #tpu.memory_space<vmem>>, vector<1x4x256xf32>
    %3 = vector.shape_cast %2 : vector<1x4x256xf32> to vector<4x256xf32>
    %c0_5 = arith.constant 0 : index
    %c0_6 = arith.constant 0 : index
    %4 = vector.load %arg4[%c0_5, %c0_6] : memref<8x4xf32, #tpu.memory_space<vmem>>, vector<8x4xf32>
    %cst = arith.constant dense<0.000000e+00> : vector<8x256xf32>
    %5 = tpu.matmul %4, %1, %cst {dimension_numbers = #tpu.dot_dimension_numbers<[1], [0], [0], [1], [0, 0, 1, 1], [], []>} : vector<8x4xf32>, vector<4x256xf32>, vector<8x256xf32> -> vector<8x256xf32>
    %c0_7 = arith.constant 0 : index
    %c0_8 = arith.constant 0 : index
    %6 = vector.load %arg5[%c0_7, %c0_8] : memref<8x4xf32, #tpu.memory_space<vmem>>, vector<8x4xf32>
    %cst_9 = arith.constant dense<0.000000e+00> : vector<8x256xf32>
    %7 = tpu.matmul %6, %3, %cst_9 {dimension_numbers = #tpu.dot_dimension_numbers<[1], [0], [0], [1], [0, 0, 1, 1], [], []>} : vector<8x4xf32>, vector<4x256xf32>, vector<8x256xf32> -> vector<8x256xf32>
    %8 = arith.addf %5, %7 : vector<8x256xf32>
    %c0_10 = arith.constant 0 : index
    %c0_11 = arith.constant 0 : index
    %9 = vector.load %arg6[%c0_10, %c0_11] : memref<8x1xf32, #tpu.memory_space<vmem>>, vector<8x1xf32>
    %10 = vector.broadcast %9 : vector<8x1xf32> to vector<8x256xf32>
    %11 = arith.addf %8, %10 : vector<8x256xf32>
    %cst_12 = arith.constant 0.000000e+00 : f32
    %12 = vector.broadcast %cst_12 : f32 to vector<8x256xf32>
    %13 = arith.maximumf %11, %12 : vector<8x256xf32>
    %c0_13 = arith.constant 0 : index
    %c0_14 = arith.constant 0 : index
    %14 = vector.load %arg7[%c0_13, %c0_14] : memref<1x8xf32, #tpu.memory_space<vmem>>, vector<1x8xf32>
    %cst_15 = arith.constant dense<0.000000e+00> : vector<1x256xf32>
    %15 = tpu.matmul %14, %13, %cst_15 {dimension_numbers = #tpu.dot_dimension_numbers<[1], [0], [0], [1], [0, 0, 1, 1], [], []>} : vector<1x8xf32>, vector<8x256xf32>, vector<1x256xf32> -> vector<1x256xf32>
    %c0_16 = arith.constant 0 : index
    %c0_17 = arith.constant 0 : index
    %16 = memref.load %arg8[%c0_16, %c0_17] : memref<1x1xf32, #tpu.memory_space<smem>>
    %17 = vector.broadcast %16 : f32 to vector<1x256xf32>
    %18 = arith.addf %15, %17 : vector<1x256xf32>
    %19 = arith.negf %18 : vector<1x256xf32>
    %20 = math.exp %19 : vector<1x256xf32>
    %cst_18 = arith.constant 1.000000e+00 : f32
    %21 = vector.broadcast %cst_18 : f32 to vector<1x256xf32>
    %22 = arith.addf %21, %20 : vector<1x256xf32>
    %23 = arith.divf %21, %22 : vector<1x256xf32>
    %24 = vector.broadcast %23 : vector<1x256xf32> to vector<4x256xf32>
    %25 = arith.mulf %3, %24 : vector<4x256xf32>
    %c0_19 = arith.constant 0 : index
    %c0_20 = arith.constant 0 : index
    %c0_21 = arith.constant 0 : index
    %26 = vector.load %arg9[%c0_19, %c0_20, %c0_21] : memref<1x4x256xf32, #tpu.memory_space<vmem>>, vector<1x4x256xf32>
    %27 = vector.shape_cast %26 : vector<1x4x256xf32> to vector<4x256xf32>
    %28 = vector.shape_cast %25 : vector<4x256xf32> to vector<1x4x256xf32>
    tpu.vector_store %arg9[%c0_19, %c0_20, %c0_21], %28 {strides = array<i32>} : memref<1x4x256xf32, #tpu.memory_space<vmem>>, vector<1x4x256xf32>,
    return
  }
  func.func @transform_0(%arg0: i32, %arg1: i32) -> (i32, i32, i32) {
    %c0_i32 = arith.constant 0 : i32
    %c0_i32_0 = arith.constant 0 : i32
    return %arg0, %c0_i32, %arg1 : i32, i32, i32
  }
  func.func @transform_1(%arg0: i32, %arg1: i32) -> (i32, i32, i32) {
    %c0_i32 = arith.constant 0 : i32
    %c0_i32_0 = arith.constant 0 : i32
    return %arg0, %c0_i32, %arg1 : i32, i32, i32
  }
  func.func @transform_2(%arg0: i32, %arg1: i32) -> (i32, i32) {
    %c0_i32 = arith.constant 0 : i32
    %c0_i32_0 = arith.constant 0 : i32
    %c0_i32_1 = arith.constant 0 : i32
    return %c0_i32, %c0_i32_0 : i32, i32
  }
  func.func @transform_3(%arg0: i32, %arg1: i32) -> (i32, i32) {
    %c0_i32 = arith.constant 0 : i32
    %c0_i32_0 = arith.constant 0 : i32
    %c0_i32_1 = arith.constant 0 : i32
    return %c0_i32, %c0_i32_0 : i32, i32
  }
  func.func @transform_4(%arg0: i32, %arg1: i32) -> (i32, i32) {
    %c0_i32 = arith.constant 0 : i32
    %c0_i32_0 = arith.constant 0 : i32
    %c0_i32_1 = arith.constant 0 : i32
    return %c0_i32, %c0_i32_0 : i32, i32
  }
  func.func @transform_5(%arg0: i32, %arg1: i32) -> (i32, i32) {
    %c0_i32 = arith.constant 0 : i32
    %c0_i32_0 = arith.constant 0 : i32
    %c0_i32_1 = arith.constant 0 : i32
    return %c0_i32, %c0_i32_0 : i32, i32
  }
  func.func @transform_6(%arg0: i32, %arg1: i32) -> (i32, i32) {
    %c0_i32 = arith.constant 0 : i32
    %c0_i32_0 = arith.constant 0 : i32
    %c0_i32_1 = arith.constant 0 : i32
    return %c0_i32, %c0_i32_0 : i32, i32
  }
  func.func @transform_7(%arg0: i32, %arg1: i32) -> (i32, i32, i32) {
    %c0_i32 = arith.constant 0 : i32
    %c0_i32_0 = arith.constant 0 : i32
    return %arg0, %c0_i32, %arg1 : i32, i32, i32
  }
}

</mosaic_0001>

<bundles_post_ra>
// kernel: attention_gate.1
= control target key start
LH: loop header
LB: loop body
LE: loop exit
PB: predicated region body
PF: predicated region fallthrough
CT: control target
= control target key end

     0   :  { %s802_s26 = smov 0   ;;  %s804_s27 = smov 0   ;;  %s864_s0 = inlined_call_operand.vmem [shape: f32[2,4,256], index: 0, kind: input, shape index: {}]   ;;  %s865_s1 = inlined_call_operand.vmem [shape: f32[2,4,256], index: 1, kind: input, shape index: {}]   ;;  %s866_s2 = inlined_call_operand.vmem [shape: f32[8,4], index: 2, kind: input, shape index: {}]   ;;  %s867_s3 = inlined_call_operand.vmem [shape: f32[8,4], index: 3, kind: input, shape index: {}]   ;;  %s868_s4 = inlined_call_operand.vmem [shape: f32[8,1], index: 4, kind: input, shape index: {}]   ;;  %s869_s5 = inlined_call_operand.vmem [shape: f32[1,8], index: 5, kind: input, shape index: {}]   ;;  %s870_s6 = inlined_call_operand.<no memory space> [shape: f32[1,1], index: 6, kind: input, shape index: {}]   ;;  %s871_s7 = inlined_call_operand.vmem [shape: f32[2,4,256], index: 7, kind: output, shape index: {}]  }
   0x1   :  { %12 = sst [smem:[#allocation2]] %s870_s6  ;;  %s806_s28 = smov 0  }
   0x2 LB: > { %s30_s6 = sadd.s32 1, %s752_s27  ;;  %p676_p0 = scmp.ge.s32.totalorder %s756_s28, 1  ;;  %s756_s28 = sphi %s806_s28, %s18_s28   ;;  %s752_s27 = sphi %s804_s27, %s873_s27   ;;  %s748_s26 = sphi %s802_s26, %s872_s26  }
   0x3   : > { %p32_p1 = scmp.ge.s32.totalorder %s30_s6, 2  ;;  %p276_p2 = scmp.lt.s32.totalorder %s756_s28, 3 }
   0x5   : > { %s875_s6 = smov (%p32_p1, %s30_s6), 0  ;;  %p277_p3 = pnand %p676_p0, %p276_p2 }
   0x6   : > { %p326_p4 = scmp.lt.s32.totalorder (!%p277_p3), %s748_s26, 1  ;;  %s474_s21 = sld [smem:[#allocation2]] (!%p277_p3) }
   0x7   : > { %280 = sbr.rel (%p277_p3) target bundleno = 337 (0x151), region = 48 }
   0xc   : > { %v758_v0 = vmov 0   ;;  %v463_v1 = vld [vmem:[%s868_s4] sm:$0xff]  ;;  %s877_s26 = smov (!%p326_p4, %s748_s26), 1  ;;  %vm367_vm0 = vcmask 1043456   ;;  %vm363_vm1 = vcmask 31744   ;;  %vm476_vm2 = vcmask 64512  }
   0xd   : > { %725 = vset.pattern.permute.xlu0 %v758_v0  ;;  %s823_s8 = sshll.u32 %s877_s26, 3  ;;  %v358_v4 = vld [vmem:[%s867_s3] sm:$0xff]  ;;  %v475_v22 = vstv %s474_s21 }
   0xe   : > { %466 = vperm.xlu0 %725, %v463_v1   ;;  %s343_s11 = scalar_lea.vmem %s865_s1, %s823_s8  ;;  %s333_s14 = scalar_lea.vmem %s864_s0, %s823_s8  ;;  %v357_v7 = vld [vmem:[%s866_s2] sm:$0xff] }
   0xf   : > { %v829_v2 = vld [vmem:[%s343_s11] sm:$0xff]  ;;  %s353_s24 = scalar_lea.vmem %s871_s7, %s823_s8 }
  0x10   : > { %360 = vst [vmem:[#allocation1] ss:$2 sm:$0xff] %v829_v2  ;;  %v355_v3 = vld [vmem:[%s333_s14] sm:$0xff] }
  0x11   : > { %v473_v21 = vld [vmem:[%s869_s5] sm:$0x1] }
  0x17   : > { %v361_v5 = vld.sshfl [vmem:[#allocation1] sm:$0xff pattern:$0x75316420]  ;;  %v362_v6 = vld.sshfl [vmem:[#allocation1 + $0x8] sm:$0xff pattern:$0x75316420] }
  0x18   : > { %413 = vst [vmem:[#allocation1] ss:$2 sm:$0xff] %v355_v3  ;;  %683 = vmatpush.msk.msra.mxu0 %vm367_vm0, %v361_v5  ;;  %685 = vmatpush.msk.msra.mxu1 %vm367_vm0, %v362_v6 }
  0x19   : > { %684 = vmatmul.msk.f32.vlgmr.msra.gmra.mxu0 %vm363_vm1, %v358_v4  ;;  %686 = vmatmul.msk.f32.vlgmr.msra.gmra.mxu1 %vm363_vm1, %v358_v4 }
  0x1f   : > { %v414_v8 = vld.sshfl [vmem:[#allocation1] sm:$0xff pattern:$0x75316420]  ;;  %v415_v9 = vld.sshfl [vmem:[#allocation1 + $0x8] sm:$0xff pattern:$0x75316420] }
  0x20   : > { %687 = vmatpush.msk.msra.mxu2 %vm367_vm0, %v414_v8  ;;  %689 = vmatpush.msk.msra.mxu3 %vm367_vm0, %v415_v9 }
  0x21   : > { %688 = vmatmul.msk.f32.vlgmr.msra.gmra.mxu2 %vm363_vm1, %v357_v7  ;;  %690 = vmatmul.msk.f32.vlgmr.msra.gmra.mxu3 %vm363_vm1, %v357_v7 }
  0x80   : > { %v467_v12 = vpop.permute.xlu0 %466 }
  0x96   : > { %v389_v10 = vpop.f32.mrf.mxu0  ;;  %v409_v11 = vpop.f32.mrf.mxu1 }
  0xa4   : > { %v440_v13 = vpop.f32.mrf.mxu2  ;;  %v460_v14 = vpop.f32.mrf.mxu3 }
  0xa5   : > { %v441_v15 = vadd.f32 %v440_v13, %v389_v10  ;;  %v461_v16 = vadd.f32 %v460_v14, %v409_v11 }
  0xa7   : > { %v469_v17 = vadd.f32 %v467_v12, %v441_v15  ;;  %v470_v18 = vadd.f32 %v467_v12, %v461_v16 }
  0xa9   : > { %v471_v19 = vmax.f32 %v469_v17, 0.0  ;;  %v472_v20 = vmax.f32 %v470_v18, 0.0 }
  0xab   : > { %495 = vmatpush.msrb.mxu0 %v471_v19  ;;  %515 = vmatpush.msrb.mxu1 %v472_v20 }
  0xac   : > { %691 = vmatmul.msk.f32.vlgmr.msrb.gmra.mxu0 %vm476_vm2, %v473_v21  ;;  %692 = vmatmul.msk.f32.vlgmr.msrb.gmra.mxu1 %vm476_vm2, %v473_v21 }
 0x129   : > { %v497_v23 = vpop.f32.mrf.mxu0  ;;  %v517_v24 = vpop.f32.mrf.mxu1 }
 0x12a   : > { %v498_v25 = vadd.f32 %v497_v23, %v475_v22  ;;  %v518_v26 = vadd.f32 %v517_v24, %v475_v22 }
 0x12c   : > { %v693_v27 = vmul.f32 -1.442695, %v498_v25  ;;  %v694_v28 = vmul.f32 -1.442695, %v518_v26 }
 0x12e   : > { %726 = vpow2.f32 %v693_v27 }
 0x12f   : > { %728 = vpow2.f32 %v694_v28 }
 0x134   : > { %v727_v29 = vpop.eup %726 }
 0x135   : > { %v729_v30 = vpop.eup %728  ;;  %v526_v31 = vadd.f32 1.0, %v727_v29 }
 0x136   : > { %v527_v32 = vadd.f32 1.0, %v729_v30 }
 0x137   : > { %730 = vrcp.f32 %v526_v31  ;;  %v539_v40 = vand.u32 2147483648, %v526_v31  ;;  %v537_v42 = vand.u32 2147483647, %v526_v31  ;;  %vm533_vm5 = vweird.f32 %v526_v31 }
 0x138   : > { %732 = vrcp.f32 %v527_v32  ;;  %v554_v41 = vand.u32 2147483648, %v527_v32  ;;  %v552_v44 = vand.u32 2147483647, %v527_v32  ;;  %vm548_vm7 = vweird.f32 %v527_v32 }
 0x139   : > { %v540_v48 = vor.u32 1.1754944e-38, %v539_v40  ;;  %vm538_vm9 = vcmp.eq.f32.partialorder %v537_v42, 8.507059e+37 }
 0x13a   : > { %v555_v49 = vor.u32 1.1754944e-38, %v554_v41  ;;  %vm553_vm10 = vcmp.eq.f32.partialorder %v552_v44, 8.507059e+37 }
 0x13d   : > { %v731_v33 = vpop.eup %730 }
 0x13e   : > { %v733_v34 = vpop.eup %732  ;;  %v529_v35 = vmul.f32 %v731_v33, %v526_v31  ;;  %vm534_vm3 = vweird.f32 %v731_v33 }
 0x13f   : > { %v544_v36 = vmul.f32 %v733_v34, %v527_v32  ;;  %vm549_vm4 = vweird.f32 %v733_v34  ;;  %vm535_vm6 = vmor %vm533_vm5, %vm534_vm3 }
 0x140   : > { %v530_v37 = vsub.f32 1.0, %v529_v35  ;;  %vm550_vm8 = vmor %vm548_vm7, %vm549_vm4 }
 0x141   : > { %v545_v38 = vsub.f32 1.0, %v544_v36 }
 0x142   : > { %v531_v39 = vmul.f32 %v731_v33, %v530_v37 }
 0x143   : > { %v546_v43 = vmul.f32 %v733_v34, %v545_v38 }
 0x144   : > { %v532_v45 = vadd.f32 %v731_v33, %v531_v39 }
 0x145   : > { %v547_v46 = vadd.f32 %v733_v34, %v546_v43 }
 0x146   : > { %v536_v47 = vsel %vm535_vm6, %v731_v33, %v532_v45 }
 0x147   : > { %v551_v50 = vsel %vm550_vm8, %v733_v34, %v547_v46  ;;  %v541_v51 = vsel %vm538_vm9, %v540_v48, %v536_v47 }
 0x148   : > { %v556_v52 = vsel %vm553_vm10, %v555_v49, %v551_v50  ;;  %v558_v54 = vperm.slane %v541_v51, 0 }
 0x149   : > { %v559_v53 = vperm.slane %v556_v52, 0 }
 0x14b   : > { %v562_v55 = vrot.slane %v559_v53, 4 }
 0x14d   : > { %v563_v56 = vsel %vm367_vm0, %v558_v54, %v562_v55 }
 0x14e   : > { %v565_v57 = vmul.f32 %v563_v56, %v829_v2 }
 0x150   : > { %566 = vst [vmem:[%s353_s24] sm:$0xff] %v565_v57 }
 0x151 PF: > { %s18_s28 = sadd.s32 1, %s756_s28   ;;  %s872_s26 = smov %s752_s27 }
 0x152   : > { %p15_p5 = scmp.ge.s32.totalorder %s18_s28, 4   ;;  %s873_s27 = smov %s875_s6 }
 0x154   :  { %17 = sbr.rel (!%p15_p5) target bundleno = 2 (0x2), region = 81 }

</bundles_post_ra>
